<compile_context>
chip_gen: v7x
topology: tpu7x:2x2x1
jax: 0.10.0
libtpu: 0.0.40
codegen_flags: <defaults>
</compile_context>

<pallas_src>
import functools

import jax
import jax.numpy as jnp
from jax.experimental import pallas as pl
from jax.experimental.pallas import tpu as pltpu


def _round_up(n, m):
    return ((n + m - 1) // m) * m


def mlp_kernel(x_ref, w1_ref, w2_ref, o_ref):
    # Cast x to the MXU input dtype in-kernel (no separate XLA convert op,
    # no extra HBM round trip for a casted copy of x).
    xb = x_ref[...].astype(w1_ref.dtype)
    # First matmul on the MXU, f32 accumulation.
    h = jnp.dot(xb, w1_ref[...], preferred_element_type=jnp.float32)
    # ReLU (torch.clamp(min=0)) on the f32 accumulator.
    h = jnp.maximum(h, 0.0)
    # Second matmul: activation cast to the weight dtype, f32 accumulation.
    o_ref[...] = jnp.dot(h.astype(w2_ref.dtype), w2_ref[...],
                         preferred_element_type=jnp.float32).astype(o_ref.dtype)


def prepare_weights(w1, w2, *, mxu_dtype=jnp.bfloat16):
    """One-time weight prep (outside the hot path): zero-pad hidden and output
    dims up to multiples of 128 (lane-dense, mathematically exact) and cast to
    the MXU dtype."""
    k, h = w1.shape
    h2, n = w2.shape
    assert h == h2
    hp = _round_up(h, 128)
    npad = _round_up(n, 128)
    w1p = jnp.pad(w1, ((0, 0), (0, hp - h))).astype(mxu_dtype)
    w2p = jnp.pad(w2, ((0, hp - h), (0, npad - n))).astype(mxu_dtype)
    return w1p, w2p


def _pick_bm(batch_n, block_bm):
    # Single fat block for small batches; for larger batches use big (<=512)
    # row blocks but guarantee >=2 grid steps so the "parallel" batch axis can
    # shard across v7x's two TensorCores.
    if batch_n <= 128:
        return batch_n
    half = _round_up(pl.cdiv(batch_n, 2), 8)
    return min(block_bm, half)


def mlp_forward(x, w1p, w2p, output_data, *, block_bm=512):
    """x: (batch, K) f32.  w1p: (K, Hp) / w2p: (Hp, Np) pre-padded bf16 weights
    from prepare_weights.  Returns (batch, output_data) f32."""
    batch_n, k = x.shape
    kp, hp = w1p.shape
    hp2, npad = w2p.shape
    assert k == kp and hp == hp2 and output_data <= npad

    bm = _pick_bm(batch_n, block_bm)
    num_blocks = pl.cdiv(batch_n, bm)

    # Honest scheduler hint (true HBM dtypes: x f32, weights bf16, out f32).
    in_bytes = (x.size * x.dtype.itemsize
                + w1p.size * w1p.dtype.itemsize
                + w2p.size * w2p.dtype.itemsize)
    out_bytes = batch_n * npad * 4
    flops = 2 * batch_n * k * hp + 2 * batch_n * hp * npad

    grid_spec = pl.GridSpec(
        grid=(num_blocks,),
        in_specs=[
            # x: streamed / pipelined over batch blocks.
            pl.BlockSpec((bm, k), lambda i: (i, 0)),
            # w1, w2: constant block index -> fetched once, resident in VMEM
            # across all grid steps.
            pl.BlockSpec((kp, hp), lambda i: (0, 0)),
            pl.BlockSpec((hp, npad), lambda i: (0, 0)),
        ],
        # Lane-dense output (Np is a multiple of 128 -> unmasked stores).
        out_specs=pl.BlockSpec((bm, npad), lambda i: (i, 0)),
    )

    out_padded = pl.pallas_call(
        mlp_kernel,
        out_shape=jax.ShapeDtypeStruct((batch_n, npad), jnp.float32),
        grid_spec=grid_spec,
        compiler_params=pltpu.CompilerParams(
            dimension_semantics=("parallel",)),
        cost_estimate=pl.CostEstimate(
            flops=flops,
            transcendentals=0,
            bytes_accessed=in_bytes + out_bytes),
    )(x, w1p, w2p)

    # Drop the zero-padded output columns (exact).
    return out_padded[:, :output_data]


if __name__ == "__main__":
    # Shapes from the module: batch=64, input=1000, hidden=100, output=10.
    batch_n, input_data, hidden_layer, output_data = 64, 1000, 100, 10

    key = jax.random.PRNGKey(0)
    kx, kw1, kw2 = jax.random.split(key, 3)
    x = jax.random.normal(kx, (batch_n, input_data), dtype=jnp.float32)
    w1 = jax.random.normal(kw1, (input_data, hidden_layer), dtype=jnp.float32)
    w2 = jax.random.normal(kw2, (hidden_layer, output_data), dtype=jnp.float32)

    # One-time weight prep (pad + cast), outside the hot path.
    w1p, w2p = prepare_weights(w1, w2)

    fwd = jax.jit(functools.partial(mlp_forward, output_data=output_data))
    out = fwd(x, w1p, w2p)
    jax.block_until_ready(out)
    assert out.shape == (batch_n, output_data)

    # Tight check against a reference using the same bf16-input / f32-accum path.
    xb = x.astype(jnp.bfloat16)
    w1b = w1.astype(jnp.bfloat16)
    w2b = w2.astype(jnp.bfloat16)
    h_ref = jnp.maximum(
        jnp.dot(xb, w1b, preferred_element_type=jnp.float32), 0.0)
    ref_bf16 = jnp.dot(h_ref.astype(jnp.bfloat16), w2b,
                       preferred_element_type=jnp.float32)
    assert jnp.allclose(out, ref_bf16, rtol=1e-2, atol=1e-1), \
        "mismatch vs bf16-path reference"

    # Loose sanity check against the full-f32 torch-equivalent reference
    # (bf16 MXU inputs are an intentional precision tradeoff).
    ref_f32 = jnp.maximum(x @ w1, 0.0) @ w2
    rel_err = jnp.max(jnp.abs(out - ref_f32)) / (jnp.max(jnp.abs(ref_f32)) + 1e-6)
    assert rel_err < 5e-2, f"relative error vs f32 reference too large: {rel_err}"

    print("KERNEL_OK")
</pallas_src>

<mosaic_0001>
module attributes {stable_mosaic.version = 11 : i64} {
  func.func @mlp_kernel(%arg0: i32, %arg1: memref<64x1000xf32, #tpu.memory_space<vmem>>, %arg2: memref<1000x128xbf16, #tpu.memory_space<vmem>>, %arg3: memref<128x128xbf16, #tpu.memory_space<vmem>>, %arg4: memref<64x128xf32, #tpu.memory_space<vmem>>) attributes {dimension_semantics = [#tpu.dimension_semantics<parallel>], iteration_bounds = array<i64: 1>, scalar_prefetch = 0 : i64, scratch_operands = 0 : i64, tpu.core_type = #tpu.core_type<tc>, window_params = [{transform_indices = @transform_0, window_bounds = array<i64: 64, 1000>}, {pipeline_mode = #tpu.pipeline_mode<synchronous>, transform_indices = @transform_1, window_bounds = array<i64: 1000, 128>}, {pipeline_mode = #tpu.pipeline_mode<synchronous>, transform_indices = @transform_2, window_bounds = array<i64: 128, 128>}, {transform_indices = @transform_3, window_bounds = array<i64: 64, 128>}]} {
    %c0 = arith.constant 0 : index
    %c0_0 = arith.constant 0 : index
    %0 = vector.load %arg1[%c0, %c0_0] : memref<64x1000xf32, #tpu.memory_space<vmem>>, vector<64x1000xf32>
    %1 = arith.truncf %0 : vector<64x1000xf32> to vector<64x1000xbf16>
    %c0_1 = arith.constant 0 : index
    %c0_2 = arith.constant 0 : index
    %2 = vector.load %arg2[%c0_1, %c0_2] : memref<1000x128xbf16, #tpu.memory_space<vmem>>, vector<1000x128xbf16>
    %cst = arith.constant dense<0.000000e+00> : vector<64x128xf32>
    %3 = tpu.matmul %1, %2, %cst {dimension_numbers = #tpu.dot_dimension_numbers<[1], [0], [0], [1], [0, 0, 1, 1], [], []>} : vector<64x1000xbf16>, vector<1000x128xbf16>, vector<64x128xf32> -> vector<64x128xf32>
    %cst_3 = arith.constant 0.000000e+00 : f32
    %4 = vector.broadcast %cst_3 : f32 to vector<64x128xf32>
    %5 = arith.maximumf %3, %4 : vector<64x128xf32>
    %6 = arith.truncf %5 : vector<64x128xf32> to vector<64x128xbf16>
    %c0_4 = arith.constant 0 : index
    %c0_5 = arith.constant 0 : index
    %7 = vector.load %arg3[%c0_4, %c0_5] : memref<128x128xbf16, #tpu.memory_space<vmem>>, vector<128x128xbf16>
    %cst_6 = arith.constant dense<0.000000e+00> : vector<64x128xf32>
    %8 = tpu.matmul %6, %7, %cst_6 {dimension_numbers = #tpu.dot_dimension_numbers<[1], [0], [0], [1], [0, 0, 1, 1], [], []>} : vector<64x128xbf16>, vector<128x128xbf16>, vector<64x128xf32> -> vector<64x128xf32>
    %c0_7 = arith.constant 0 : index
    %c0_8 = arith.constant 0 : index
    %9 = vector.load %arg4[%c0_7, %c0_8] : memref<64x128xf32, #tpu.memory_space<vmem>>, vector<64x128xf32>
    tpu.vector_store %arg4[%c0_7, %c0_8], %8 {strides = array<i32>} : memref<64x128xf32, #tpu.memory_space<vmem>>, vector<64x128xf32>,
    return
  }
  func.func @transform_0(%arg0: i32) -> (i32, i32) {
    %c0_i32 = arith.constant 0 : i32
    %c0_i32_0 = arith.constant 0 : i32
    return %arg0, %c0_i32 : i32, i32
  }
  func.func @transform_1(%arg0: i32) -> (i32, i32) {
    %c0_i32 = arith.constant 0 : i32
    %c0_i32_0 = arith.constant 0 : i32
    %c0_i32_1 = arith.constant 0 : i32
    return %c0_i32, %c0_i32_0 : i32, i32
  }
  func.func @transform_2(%arg0: i32) -> (i32, i32) {
    %c0_i32 = arith.constant 0 : i32
    %c0_i32_0 = arith.constant 0 : i32
    %c0_i32_1 = arith.constant 0 : i32
    return %c0_i32, %c0_i32_0 : i32, i32
  }
  func.func @transform_3(%arg0: i32) -> (i32, i32) {
    %c0_i32 = arith.constant 0 : i32
    %c0_i32_0 = arith.constant 0 : i32
    return %arg0, %c0_i32 : i32, i32
  }
}

</mosaic_0001>

<bundles_post_ra>
// kernel: mlp_forward.1
= control target key start
LH: loop header
LB: loop body
LE: loop exit
PB: predicated region body
PF: predicated region fallthrough
CT: control target
= control target key end

     0   :  { %8 = vsyncpa [#allocation3], 0  ;;  %s1576_s0 = inlined_call_operand.hbm [shape: f32[64,1000], index: 0, kind: input, shape index: {}]   ;;  %s1577_s1 = inlined_call_operand.hbm [shape: bf16[1000,128], index: 1, kind: input, shape index: {}]   ;;  %s1578_s2 = inlined_call_operand.hbm [shape: bf16[128,128], index: 2, kind: input, shape index: {}]   ;;  %s1579_s3 = inlined_call_operand.vmem [shape: f32[64,128], index: 3, kind: output, shape index: {}]  }
   0x1   :  { %9 = vsyncpa [#allocation5], 0  ;;  %s1463_s12 = smov [#allocation4]   ;;  %s1393_s16 = scalar_lea.hbm %s1577_s1, 8000 }
   0x2   :  { %s27_s13 = sshll.u32 %s1463_s12, 4  ;;  %p1394_p0 = scmp.ne.s32.totalorder %s1577_s1, %s1393_s16  ;;  %s28_s13 = int_to_ptr.vmem [resolvable:$true] %s27_s13 }
   0x3   :  { %p1397_p1 = scmp.lt.u32.totalorder %s1393_s16, %s1577_s1 }
   0x5   :  { %p1399_p2 = pnand %p1397_p1, %p1394_p0 }
   0x7   :  { %1402 = shalt.err (!%p1399_p2)
}
   0x8   :  { %s1403_s21 = scalar_lea.vmem %s28_s13, 8000  ;;  %p1408_p4 = scmp.lt.s32.totalorder %s28_s13, %s28_s13 }
   0x9   :  { %p1404_p3 = scmp.ne.s32.totalorder %s28_s13, %s1403_s21  ;;  %p1409_p5 = scmp.lt.s32.totalorder %s1403_s21, %s1403_s21 }
   0xb   :  { %p1410_p6 = por %p1409_p5, %p1408_p4 }
   0xd   :  { %p1411_p7 = pnand %p1410_p6, %p1404_p3 }
   0xf   :  { %1414 = shalt.err (!%p1411_p7)
}
  0x10   :  { %s1464_s22 = smov 64   ;;  %s1465_s23 = smov 4  }
  0x11   :  { %33 = dma.hbm_to_vmem [thread:$0]  %s1577_s1, 8000, %s28_s13, [#allocation5], %s1464_s22, %s1464_s22, %s1465_s23  }
  0x12   :  { %s1466_s26 = smov [#allocation2]   ;;  %s1415_s30 = scalar_lea.hbm %s1576_s0, 8192 }
  0x13   :  { %s15_s27 = sshll.u32 %s1466_s26, 4  ;;  %p1416_p8 = scmp.ne.s32.totalorder %s1576_s0, %s1415_s30  ;;  %s16_s27 = int_to_ptr.vmem [resolvable:$true] %s15_s27 }
  0x14   :  { %p1419_p9 = scmp.lt.u32.totalorder %s1415_s30, %s1576_s0 }
  0x16   :  { %p1421_p10 = pnand %p1419_p9, %p1416_p8 }
  0x18   :  { %1424 = shalt.err (!%p1421_p10)
}
  0x19   :  { %s1425_s8 = scalar_lea.vmem %s16_s27, 8192  ;;  %p1430_p12 = scmp.lt.s32.totalorder %s16_s27, %s16_s27 }
  0x1a   :  { %p1426_p11 = scmp.ne.s32.totalorder %s16_s27, %s1425_s8  ;;  %p1431_p13 = scmp.lt.s32.totalorder %s1425_s8, %s1425_s8 }
  0x1c   :  { %p1432_p0 = por %p1431_p13, %p1430_p12 }
  0x1e   :  { %p1433_p1 = pnand %p1432_p0, %p1426_p11 }
  0x20   :  { %1436 = shalt.err (!%p1433_p1)
}
  0x21   :  { %s1467_s1 = smov 1024   ;;  %s1468_s11 = smov [#allocation6]  }
  0x22   :  { %21 = dma.hbm_to_vmem [thread:$0]  %s1576_s0, 8192, %s16_s27, [#allocation3], %s1467_s1, %s1467_s1, %s1464_s22  }
  0x23   :  { %s39_s12 = sshll.u32 %s1468_s11, 4  ;;  %s1437_s15 = scalar_lea.hbm %s1578_s2, 1024  ;;  %s40_s12 = int_to_ptr.vmem [resolvable:$true] %s39_s12 }
  0x24   :  { %p1438_p2 = scmp.ne.s32.totalorder %s1578_s2, %s1437_s15  ;;  %p1441_p3 = scmp.lt.u32.totalorder %s1437_s15, %s1578_s2 }
  0x26   :  { %p1443_p4 = pnand %p1441_p3, %p1438_p2 }
  0x28   :  { %1446 = shalt.err (!%p1443_p4)
}
  0x29   :  { %s1447_s20 = scalar_lea.vmem %s40_s12, 1024  ;;  %p1452_p6 = scmp.lt.s32.totalorder %s40_s12, %s40_s12 }
  0x2a   :  { %p1448_p5 = scmp.ne.s32.totalorder %s40_s12, %s1447_s20  ;;  %p1453_p7 = scmp.lt.s32.totalorder %s1447_s20, %s1447_s20 }
  0x2c   :  { %p1454_p8 = por %p1453_p7, %p1452_p6 }
  0x2e   :  { %p1455_p9 = pnand %p1454_p8, %p1448_p5 }
  0x30   :  { %1458 = shalt.err (!%p1455_p9)
}
  0x31   :  { %45 = dma.hbm_to_vmem [thread:$0]  %s1578_s2, 1024, %s40_s12, [#allocation5], %s1464_s22, %s1464_s22, %s1465_s23  }
  0x32   :  { %1459 = dma.done.wait [#allocation3], 8192  }
  0x33   :  { %1460 = vsyncadd [#allocation3], 4294959104 }
  0x34   :  { %1461 = dma.done.wait [#allocation5], 9024  }
  0x35   :  { %1462 = vsyncadd [#allocation5], 4294958272  ;;  %v1322_v0 = vld [vmem:[#allocation4 + $0x40] sm:$0xff]   ;;  %v1326_v4 = vld [vmem:[#allocation4 + $0x48] sm:$0xff]   ;;  %v1469_v43 = vmov 0   ;;  %vm652_vm0 = vcmask 850944  }
  0x36   :  { %v1323_v1 = vld [vmem:[#allocation4 + $0xc0] sm:$0xff]   ;;  %1159 = vmatprep.subr.bf16.mxu0 %v1322_v0  ;;  %v1327_v5 = vld [vmem:[#allocation4 + $0xc8] sm:$0xff]   ;;  %v1330_v8 = vld [vmem:[#allocation4 + $0x50] sm:$0xff]   ;;  %vm665_vm1 = vcmask 1043456  }
  0x37   :  { %v1324_v2 = vld [vmem:[#allocation4] sm:$0xff]   ;;  %1199 = vmatprep.subr.bf16.mxu1 %v1323_v1  ;;  %v1328_v6 = vld [vmem:[#allocation4 + $0x8] sm:$0xff]   ;;  %v1331_v9 = vld [vmem:[#allocation4 + $0xd0] sm:$0xff]  }
  0x38   :  { %v1325_v3 = vld [vmem:[#allocation4 + $0x80] sm:$0xff]   ;;  %1160 = vmatpush3.bf16.msra.mxu0 %v1324_v2  ;;  %v1329_v7 = vld [vmem:[#allocation4 + $0x88] sm:$0xff]   ;;  %v1332_v10 = vld [vmem:[#allocation4 + $0x10] sm:$0xff]  }
  0x39   :  { %1200 = vmatpush3.bf16.msra.mxu1 %v1325_v3  ;;  %1161 = vmatprep.subr.bf16.mxu0 %v1326_v4  ;;  %v1333_v11 = vld [vmem:[#allocation4 + $0x90] sm:$0xff]   ;;  %v1334_v12 = vld [vmem:[#allocation4 + $0x58] sm:$0xff]   ;;  %v1338_v16 = vld [vmem:[#allocation4 + $0x60] sm:$0xff]  }
  0x3a   :  { %1201 = vmatprep.subr.bf16.mxu1 %v1327_v5  ;;  %v1335_v13 = vld [vmem:[#allocation4 + $0xd8] sm:$0xff]   ;;  %v1339_v17 = vld [vmem:[#allocation4 + $0xe0] sm:$0xff]   ;;  %v1342_v20 = vld [vmem:[#allocation4 + $0x68] sm:$0xff]  }
  0x3b   :  { %v1336_v14 = vld [vmem:[#allocation4 + $0x18] sm:$0xff]   ;;  %v1340_v18 = vld [vmem:[#allocation4 + $0x20] sm:$0xff]   ;;  %v1343_v21 = vld [vmem:[#allocation4 + $0xe8] sm:$0xff]  }
  0x3c   :  { %1162 = vmatpush3.bf16.msra.mxu0 %v1328_v6  ;;  %v1337_v15 = vld [vmem:[#allocation4 + $0x98] sm:$0xff]   ;;  %v1341_v19 = vld [vmem:[#allocation4 + $0xa0] sm:$0xff]   ;;  %v1344_v22 = vld [vmem:[#allocation4 + $0x28] sm:$0xff]  }
  0x3d   :  { %1202 = vmatpush3.bf16.msra.mxu1 %v1329_v7  ;;  %1163 = vmatprep.subr.bf16.mxu0 %v1330_v8  ;;  %v1345_v23 = vld [vmem:[#allocation4 + $0xa8] sm:$0xff]   ;;  %v1346_v24 = vld [vmem:[#allocation4 + $0x70] sm:$0xff]   ;;  %v1350_v28 = vld [vmem:[#allocation4 + $0x78] sm:$0xff]  }
  0x3e   :  { %1203 = vmatprep.subr.bf16.mxu1 %v1331_v9  ;;  %v1347_v25 = vld [vmem:[#allocation4 + $0xf0] sm:$0xff]   ;;  %v1351_v29 = vld [vmem:[#allocation4 + $0xf8] sm:$0xff]   ;;  %v57_v32 = vld [vmem:[#allocation2 + $0x8] sm:$0xff] }
  0x3f   :  { %v1348_v26 = vld [vmem:[#allocation4 + $0x30] sm:$0xff]   ;;  %v1352_v30 = vld [vmem:[#allocation4 + $0x38] sm:$0xff]   ;;  %v65_v33 = vld [vmem:[#allocation2 + $0x48] sm:$0xff] }
  0x40   :  { %1164 = vmatpush3.bf16.msra.mxu0 %v1332_v10  ;;  %v1349_v27 = vld [vmem:[#allocation4 + $0xb0] sm:$0xff]   ;;  %v1353_v31 = vld [vmem:[#allocation4 + $0xb8] sm:$0xff]   ;;  %v121_v35 = vpack.c.bf16 %v65_v33, %v57_v32  ;;  %v56_v37 = vld [vmem:[#allocation2] sm:$0xff] }
  0x41   :  { %1204 = vmatpush3.bf16.msra.mxu1 %v1333_v11  ;;  %1165 = vmatprep.subr.bf16.mxu0 %v1334_v12  ;;  %v59_v34 = vld [vmem:[#allocation2 + $0x18] sm:$0xff]  ;;  %v64_v38 = vld [vmem:[#allocation2 + $0x40] sm:$0xff]  ;;  %v58_v41 = vld [vmem:[#allocation2 + $0x10] sm:$0xff] }
  0x42   :  { %1205 = vmatprep.subr.bf16.mxu1 %v1335_v13  ;;  %v67_v36 = vld [vmem:[#allocation2 + $0x58] sm:$0xff]  ;;  %v120_v40 = vpack.c.bf16 %v64_v38, %v56_v37  ;;  %v66_v42 = vld [vmem:[#allocation2 + $0x50] sm:$0xff]  ;;  %701 = vmatprep.mubr.bf16.mxu0 %v121_v35  ;;  %v1354_v45 = vld [vmem:[#allocation4 + $0x140] sm:$0xff]  }
  0x43   :  { %v123_v39 = vpack.c.bf16 %v67_v36, %v59_v34  ;;  %v122_v44 = vpack.c.bf16 %v66_v42, %v58_v41  ;;  %v1355_v46 = vld [vmem:[#allocation4 + $0x100] sm:$0xff]   ;;  %v1357_v48 = vld [vmem:[#allocation4 + $0x148] sm:$0xff]   ;;  %v1360_v57 = vld [vmem:[#allocation4 + $0x150] sm:$0xff]  }
  0x44   :  { %1166 = vmatpush3.bf16.msra.mxu0 %v1336_v14  ;;  %v1356_v47 = vld [vmem:[#allocation4 + $0x180] sm:$0xff]   ;;  %v1358_v49 = vld [vmem:[#allocation4 + $0x108] sm:$0xff]   ;;  %v1361_v58 = vld [vmem:[#allocation4 + $0x110] sm:$0xff]  }
  0x45   :  { %1206 = vmatpush3.bf16.msra.mxu1 %v1337_v15  ;;  %1167 = vmatprep.subr.bf16.mxu0 %v1338_v16  ;;  %v1359_v50 = vld [vmem:[#allocation4 + $0x188] sm:$0xff]   ;;  %v72_v53 = vld [vmem:[#allocation2 + $0x80] sm:$0xff]  ;;  %v1362_v59 = vld [vmem:[#allocation4 + $0x190] sm:$0xff]  }
  0x46   :  { %1207 = vmatprep.subr.bf16.mxu1 %v1339_v17  ;;  %766 = vmatprep.mubr.bf16.mxu1 %v123_v39  ;;  %v73_v51 = vld [vmem:[#allocation2 + $0x88] sm:$0xff]  ;;  %v80_v54 = vld [vmem:[#allocation2 + $0xc0] sm:$0xff]  ;;  %v1363_v60 = vld [vmem:[#allocation4 + $0x158] sm:$0xff]  }
  0x47   :  { %v81_v52 = vld [vmem:[#allocation2 + $0xc8] sm:$0xff]  ;;  %v128_v56 = vpack.c.bf16 %v80_v54, %v72_v53  ;;  %v1364_v61 = vld [vmem:[#allocation4 + $0x118] sm:$0xff]   ;;  %v88_v1 = vld [vmem:[#allocation2 + $0x100] sm:$0xff] }
  0x48   :  { %1168 = vmatpush3.bf16.msra.mxu0 %v1340_v18  ;;  %v129_v55 = vpack.c.bf16 %v81_v52, %v73_v51  ;;  %v1365_v62 = vld [vmem:[#allocation4 + $0x198] sm:$0xff]   ;;  %v89_v63 = vld [vmem:[#allocation2 + $0x108] sm:$0xff]  ;;  %v96_v3 = vld [vmem:[#allocation2 + $0x140] sm:$0xff] }
  0x49   :  { %1208 = vmatpush3.bf16.msra.mxu1 %v1341_v19  ;;  %1169 = vmatprep.subr.bf16.mxu0 %v1342_v20  ;;  %v97_v0 = vld [vmem:[#allocation2 + $0x148] sm:$0xff]  ;;  %v136_v4 = vpack.c.bf16 %v96_v3, %v88_v1  ;;  %v1366_v5 = vld [vmem:[#allocation4 + $0x160] sm:$0xff]   ;;  %v1372_v17 = vld [vmem:[#allocation4 + $0x170] sm:$0xff]  }
  0x4a   :  { %1209 = vmatprep.subr.bf16.mxu1 %v1343_v21  ;;  %v137_v2 = vpack.c.bf16 %v97_v0, %v89_v63  ;;  %v1367_v6 = vld [vmem:[#allocation4 + $0x120] sm:$0xff]   ;;  %v1369_v8 = vld [vmem:[#allocation4 + $0x168] sm:$0xff]   ;;  %v1373_v18 = vld [vmem:[#allocation4 + $0x130] sm:$0xff]  }
  0x4b   :  { %v1368_v7 = vld [vmem:[#allocation4 + $0x1a0] sm:$0xff]   ;;  %v1370_v9 = vld [vmem:[#allocation4 + $0x128] sm:$0xff]   ;;  %v1374_v19 = vld [vmem:[#allocation4 + $0x1b0] sm:$0xff]  }
  0x4c   :  { %1170 = vmatpush3.bf16.msra.mxu0 %v1344_v22  ;;  %v1371_v10 = vld [vmem:[#allocation4 + $0x1a8] sm:$0xff]   ;;  %v104_v14 = vld [vmem:[#allocation2 + $0x180] sm:$0xff]  ;;  %v75_v20 = vld [vmem:[#allocation2 + $0x98] sm:$0xff] }
  0x4d   :  { %1210 = vmatpush3.bf16.msra.mxu1 %v1345_v23  ;;  %1171 = vmatprep.subr.bf16.mxu0 %v1346_v24  ;;  %v105_v11 = vld [vmem:[#allocation2 + $0x188] sm:$0xff]  ;;  %v112_v15 = vld [vmem:[#allocation2 + $0x1c0] sm:$0xff]  ;;  %v83_v21 = vld [vmem:[#allocation2 + $0xd8] sm:$0xff] }
  0x4e   :  { %1211 = vmatprep.subr.bf16.mxu1 %v1347_v25  ;;  %v113_v12 = vld [vmem:[#allocation2 + $0x1c8] sm:$0xff]  ;;  %v144_v16 = vpack.c.bf16 %v112_v15, %v104_v14  ;;  %v74_v22 = vld [vmem:[#allocation2 + $0x90] sm:$0xff]  ;;  %v131_v24 = vpack.c.bf16 %v83_v21, %v75_v20  ;;  %v68_v33 = vld [vmem:[#allocation2 + $0x60] sm:$0xff] }
  0x4f   :  { %v145_v13 = vpack.c.bf16 %v113_v12, %v105_v11  ;;  %v82_v23 = vld [vmem:[#allocation2 + $0xd0] sm:$0xff]  ;;  %v1378_v35 = vld [vmem:[#allocation4 + $0x1c0] sm:$0xff]   ;;  %v91_v36 = vld [vmem:[#allocation2 + $0x118] sm:$0xff] }
  0x50   :  { %1172 = vmatpush3.bf16.msra.mxu0 %v1348_v26  ;;  %v130_v25 = vpack.c.bf16 %v82_v23, %v74_v22  ;;  %v1375_v26 = vld [vmem:[#allocation4 + $0x178] sm:$0xff]   ;;  %v90_v39 = vld [vmem:[#allocation2 + $0x110] sm:$0xff]  ;;  %v77_v42 = vld [vmem:[#allocation2 + $0xa8] sm:$0xff] }
  0x51   :  { %1212 = vmatpush3.bf16.msra.mxu1 %v1349_v27  ;;  %1173 = vmatprep.subr.bf16.mxu0 %v1350_v28  ;;  %v1376_v27 = vld [vmem:[#allocation4 + $0x138] sm:$0xff]   ;;  %v106_v52 = vld [vmem:[#allocation2 + $0x190] sm:$0xff]  ;;  %v109_v0 = vld [vmem:[#allocation2 + $0x1a8] sm:$0xff] }
  0x52   :  { %1213 = vmatprep.subr.bf16.mxu1 %v1351_v29  ;;  %v1377_v28 = vld [vmem:[#allocation4 + $0x1b8] sm:$0xff]   ;;  %v61_v29 = vld [vmem:[#allocation2 + $0x28] sm:$0xff]  ;;  %v114_v54 = vld [vmem:[#allocation2 + $0x1d0] sm:$0xff] }
  0x53   :  { %v99_v37 = vld [vmem:[#allocation2 + $0x158] sm:$0xff]  ;;  %v117_v1 = vld [vmem:[#allocation2 + $0x1e8] sm:$0xff]  ;;  %v62_v12 = vld [vmem:[#allocation2 + $0x30] sm:$0xff] }
  0x54   :  { %1174 = vmatpush3.bf16.msra.mxu0 %v1352_v30  ;;  %v69_v30 = vld [vmem:[#allocation2 + $0x68] sm:$0xff]  ;;  %v139_v38 = vpack.c.bf16 %v99_v37, %v91_v36  ;;  %v63_v63 = vld [vmem:[#allocation2 + $0x38] sm:$0xff]  ;;  %v86_v20 = vld [vmem:[#allocation2 + $0xf0] sm:$0xff] }
  0x55   :  { %1214 = vmatpush3.bf16.msra.mxu1 %v1353_v31  ;;  %1239 = vmatprep.subr.bf16.mxu0 %v1354_v45  ;;  %v60_v31 = vld [vmem:[#allocation2 + $0x20] sm:$0xff]  ;;  %v125_v32 = vpack.c.bf16 %v69_v30, %v61_v29  ;;  %v79_v15 = vld [vmem:[#allocation2 + $0xb8] sm:$0xff]  ;;  %v110_v30 = vld [vmem:[#allocation2 + $0x1b0] sm:$0xff] }
  0x56   :  { %864 = vmatprep.subr.bf16.mxu1 %v1469_v43  ;;  %v124_v34 = vpack.c.bf16 %v68_v33, %v60_v31  ;;  %v76_v45 = vld [vmem:[#allocation2 + $0xa0] sm:$0xff]  ;;  %v95_v21 = vld [vmem:[#allocation2 + $0x138] sm:$0xff]  ;;  %v118_v31 = vld [vmem:[#allocation2 + $0x1f0] sm:$0xff] }
  0x57   :  { %702 = vmatmul.mubr.bf16.vlgmr.msra.gmra.mrb[0].mxu0 %v120_v40  ;;  %v98_v40 = vld [vmem:[#allocation2 + $0x150] sm:$0xff]  ;;  %v103_v22 = vld [vmem:[#allocation2 + $0x178] sm:$0xff] }
  0x58   :  { %767 = vmatmul.mubr.bf16.vlgmr.msra.gmra.mrb[0].mxu1 %v122_v44  ;;  %1240 = vmatpush3.bf16.msra.mxu0 %v1355_v46  ;;  %v138_v41 = vpack.c.bf16 %v98_v40, %v90_v39  ;;  %v85_v44 = vld [vmem:[#allocation2 + $0xe8] sm:$0xff]  ;;  %v1385_v33 = vld [vmem:[#allocation6] sm:$0xff]  }
  0x59   :  { %865 = vmatpush1.bf16.msra.mxu1 %v1356_v47  ;;  %1241 = vmatprep.subr.bf16.mxu0 %v1357_v48  ;;  %v133_v46 = vpack.c.bf16 %v85_v44, %v77_v42  ;;  %v84_v47 = vld [vmem:[#allocation2 + $0xe0] sm:$0xff]  ;;  %v1379_v48 = vld [vmem:[#allocation4 + $0x1c8] sm:$0xff]   ;;  %v1389_v37 = vld [vmem:[#allocation6 + $0x20] sm:$0xff]  }
  0x5a   :  { %866 = vmatprep.subr.bf16.mxu1 %v1469_v43  ;;  %709 = vmatprep.mubr.bf16.mxu0 %v129_v55  ;;  %v132_v53 = vpack.c.bf16 %v84_v47, %v76_v45  ;;  %v93_v55 = vld [vmem:[#allocation2 + $0x128] sm:$0xff] }
  0x5b   :  { %774 = vmatprep.mubr.bf16.mxu1 %v131_v24  ;;  %v143_v24 = vpack.c.bf16 %v103_v22, %v95_v21  ;;  %v1388_v36 = vld [vmem:[#allocation6 + $0x18] sm:$0xff]   ;;  %v1391_v39 = vld [vmem:[#allocation6 + $0x30] sm:$0xff]  }
  0x5c   :  { %1242 = vmatpush3.bf16.msra.mxu0 %v1358_v49  ;;  %v107_v49 = vld [vmem:[#allocation2 + $0x198] sm:$0xff]  ;;  %v1392_v40 = vld [vmem:[#allocation6 + $0x38] sm:$0xff]  }
  0x5d   :  { %867 = vmatpush1.bf16.msra.mxu1 %v1359_v50  ;;  %1243 = vmatprep.subr.bf16.mxu0 %v1360_v57  ;;  %v115_v50 = vld [vmem:[#allocation2 + $0x1d8] sm:$0xff] }
  0x5e   :  { %868 = vmatprep.subr.bf16.mxu1 %v1469_v43  ;;  %v147_v51 = vpack.c.bf16 %v115_v50, %v107_v49 }
  0x5f   :  { %710 = vmatmul.mubr.bf16.gmra.mrb[4].mxu0 %v128_v56  ;;  %v101_v56 = vld [vmem:[#allocation2 + $0x168] sm:$0xff] }
  0x60   :  { %1244 = vmatpush3.bf16.msra.mxu0 %v1361_v58  ;;  %717 = vmatprep.mubr.bf16.mxu0 %v137_v2  ;;  %v141_v57 = vpack.c.bf16 %v101_v56, %v93_v55  ;;  %v1380_v58 = vld [vmem:[#allocation4 + $0x1d0] sm:$0xff]   ;;  %v71_v2 = vld [vmem:[#allocation2 + $0x78] sm:$0xff] }
  0x61   :  { %869 = vmatpush1.bf16.msra.mxu1 %v1362_v59  ;;  %1245 = vmatprep.subr.bf16.mxu0 %v1363_v60  ;;  %v146_v59 = vpack.c.bf16 %v114_v54, %v106_v52  ;;  %v1381_v60 = vld [vmem:[#allocation4 + $0x1d8] sm:$0xff]   ;;  %v127_v3 = vpack.c.bf16 %v71_v2, %v63_v63 }
  0x62   :  { %870 = vmatprep.subr.bf16.mxu1 %v1469_v43  ;;  %775 = vmatmul.mubr.bf16.gmra.mrb[4].mxu1 %v130_v25  ;;  %v102_v25 = vld [vmem:[#allocation2 + $0x170] sm:$0xff] }
  0x63   :  { %782 = vmatprep.mubr.bf16.mxu1 %v139_v38  ;;  %v1390_v38 = vld [vmem:[#allocation6 + $0x28] sm:$0xff]  }
  0x64   :  { %1246 = vmatpush3.bf16.msra.mxu0 %v1364_v61  ;;  %v92_v61 = vld [vmem:[#allocation2 + $0x120] sm:$0xff] }
  0x65   :  { %871 = vmatpush1.bf16.msra.mxu1 %v1365_v62  ;;  %1247 = vmatprep.subr.bf16.mxu0 %v1366_v5  ;;  %v100_v62 = vld [vmem:[#allocation2 + $0x160] sm:$0xff]  ;;  %v149_v5 = vpack.c.bf16 %v117_v1, %v109_v0 }
  0x66   :  { %872 = vmatprep.subr.bf16.mxu1 %v1469_v43 }
  0x67   :  { %718 = vmatmul.mubr.bf16.gmra.mrb[8].mxu0 %v136_v4  ;;  %v140_v4 = vpack.c.bf16 %v100_v62, %v92_v61 }
  0x68   :  { %1248 = vmatpush3.bf16.msra.mxu0 %v1367_v6  ;;  %725 = vmatprep.mubr.bf16.mxu0 %v145_v13  ;;  %v1382_v6 = vld [vmem:[#allocation4 + $0x1e0] sm:$0xff]   ;;  %v70_v13 = vld [vmem:[#allocation2 + $0x70] sm:$0xff] }
  0x69   :  { %873 = vmatpush1.bf16.msra.mxu1 %v1368_v7  ;;  %1249 = vmatprep.subr.bf16.mxu0 %v1369_v8  ;;  %v108_v7 = vld [vmem:[#allocation2 + $0x1a0] sm:$0xff] }
  0x6a   :  { %874 = vmatprep.subr.bf16.mxu1 %v1469_v43  ;;  %783 = vmatmul.mubr.bf16.gmra.mrb[8].mxu1 %v138_v41  ;;  %v116_v8 = vld [vmem:[#allocation2 + $0x1e0] sm:$0xff] }
  0x6b   :  { %790 = vmatprep.mubr.bf16.mxu1 %v147_v51  ;;  %v148_v11 = vpack.c.bf16 %v116_v8, %v108_v7 }
  0x6c   :  { %1250 = vmatpush3.bf16.msra.mxu0 %v1370_v9  ;;  %v1383_v9 = vld [vmem:[#allocation4 + $0x1e8] sm:$0xff]  }
  0x6d   :  { %875 = vmatpush1.bf16.msra.mxu1 %v1371_v10  ;;  %1251 = vmatprep.subr.bf16.mxu0 %v1372_v17  ;;  %v1384_v10 = vld [vmem:[#allocation4 + $0x1f0] ss:$0 sps:$4 sm:$0xff]   ;;  %v126_v17 = vpack.c.bf16 %v70_v13, %v62_v12 }
  0x6e   :  { %876 = vmatprep.subr.bf16.mxu1 %v1469_v43  ;;  %v667_v14 = vsel %vm665_vm1, %v1384_v10, 0 }
  0x6f   :  { %726 = vmatmul.mubr.bf16.gmra.mrb[12].mxu0 %v144_v16  ;;  %v87_v16 = vld [vmem:[#allocation2 + $0xf8] sm:$0xff] }
  0x70   :  { %1252 = vmatpush3.bf16.msra.mxu0 %v1373_v18  ;;  %831 = vmatprep.mubr.bf16.mxu0 %v125_v32  ;;  %v135_v18 = vpack.c.bf16 %v87_v16, %v79_v15  ;;  %v150_v32 = vpack.c.bf16 %v118_v31, %v110_v30 }
  0x71   :  { %877 = vmatpush1.bf16.msra.mxu1 %v1374_v19  ;;  %1253 = vmatprep.subr.bf16.mxu0 %v1375_v26  ;;  %v78_v19 = vld [vmem:[#allocation2 + $0xb0] sm:$0xff]  ;;  %v111_v26 = vld [vmem:[#allocation2 + $0x1b8] sm:$0xff] }
  0x72   :  { %878 = vmatprep.subr.bf16.mxu1 %v1469_v43  ;;  %791 = vmatmul.mubr.bf16.gmra.mrb[12].mxu1 %v146_v59  ;;  %v134_v23 = vpack.c.bf16 %v86_v20, %v78_v19 }
  0x73   :  { %1147 = vmatprep.mubr.msk.bf16.mxu1 %vm652_vm0, %v127_v3 }
  0x74   :  { %1254 = vmatpush3.bf16.msra.mxu0 %v1376_v27  ;;  %v119_v27 = vld [vmem:[#allocation2 + $0x1f8] sm:$0xff] }
  0x75   :  { %879 = vmatpush1.bf16.msra.mxu1 %v1377_v28  ;;  %v151_v29 = vpack.c.bf16 %v119_v27, %v111_v26  ;;  %1291 = vmatprep.subr.bf16.mxu0 %v1385_v33 }
  0x76   :  { %880 = vmatprep.subr.bf16.mxu1 %v1469_v43 }
  0x77   :  { %832 = vmatmul.mubr.bf16.vlgmr.msra.gmra.mrb[16].mxu0 %v124_v34  ;;  %v1386_v34 = vld [vmem:[#allocation6 + $0x8] sm:$0xff]  }
  0x78   :  { %839 = vmatprep.mubr.bf16.mxu0 %v133_v46  ;;  %1292 = vmatpush3.bf16.msra.mxu0 %v1385_v33 }
  0x79   :  { %881 = vmatpush1.bf16.msra.mxu1 %v1378_v35  ;;  %1293 = vmatprep.subr.bf16.mxu0 %v1386_v34  ;;  %v1387_v35 = vld [vmem:[#allocation6 + $0x10] sm:$0xff]  }
  0x7a   :  { %882 = vmatprep.subr.bf16.mxu1 %v1469_v43 }
  0x7c   :  { %1294 = vmatpush3.bf16.msra.mxu0 %v1386_v34 }
  0x7d   :  { %883 = vmatpush1.bf16.msra.mxu1 %v1379_v48  ;;  %1295 = vmatprep.subr.bf16.mxu0 %v1387_v35 }
  0x7e   :  { %884 = vmatprep.subr.bf16.mxu1 %v1469_v43 }
  0x7f   :  { %840 = vmatmul.mubr.bf16.gmra.mrb[20].mxu0 %v132_v53 }
  0x80   :  { %847 = vmatprep.mubr.bf16.mxu0 %v141_v57  ;;  %1296 = vmatpush3.bf16.msra.mxu0 %v1387_v35 }
  0x81   :  { %885 = vmatpush1.bf16.msra.mxu1 %v1380_v58  ;;  %1297 = vmatprep.subr.bf16.mxu0 %v1388_v36 }
  0x82   :  { %886 = vmatprep.subr.bf16.mxu1 %v1469_v43 }
  0x84   :  { %1298 = vmatpush3.bf16.msra.mxu0 %v1388_v36 }
  0x85   :  { %887 = vmatpush1.bf16.msra.mxu1 %v1381_v60  ;;  %1299 = vmatprep.subr.bf16.mxu0 %v1389_v37 }
  0x86   :  { %888 = vmatprep.subr.bf16.mxu1 %v1469_v43 }
  0x87   :  { %848 = vmatmul.mubr.bf16.gmra.mrb[24].mxu0 %v140_v4 }
  0x88   :  { %855 = vmatprep.mubr.bf16.mxu0 %v149_v5  ;;  %1300 = vmatpush3.bf16.msra.mxu0 %v1389_v37 }
  0x89   :  { %889 = vmatpush1.bf16.msra.mxu1 %v1382_v6  ;;  %1301 = vmatprep.subr.bf16.mxu0 %v1390_v38 }
  0x8a   :  { %890 = vmatprep.subr.bf16.mxu1 %v1469_v43 }
  0x8c   :  { %1302 = vmatpush3.bf16.msra.mxu0 %v1390_v38 }
  0x8d   :  { %891 = vmatpush1.bf16.msra.mxu1 %v1383_v9  ;;  %1303 = vmatprep.subr.bf16.mxu0 %v1391_v39 }
  0x8e   :  { %892 = vmatprep.subr.bf16.mxu1 %v1469_v43  ;;  %v94_v43 = vld [vmem:[#allocation2 + $0x130] sm:$0xff] }
  0x8f   :  { %856 = vmatmul.mubr.bf16.gmra.mrb[28].mxu0 %v148_v11  ;;  %v142_v28 = vpack.c.bf16 %v102_v25, %v94_v43 }
  0x90   :  { %1304 = vmatpush3.bf16.msra.mxu0 %v1391_v39 }
  0x91   :  { %893 = vmatpush1.bf16.msra.mxu1 %v667_v14  ;;  %1305 = vmatprep.subr.bf16.mxu0 %v1392_v40 }
  0x94   :  { %897 = vmatmul.mubr.bf16.vlgmr.msra.gmra.mrb[16].mxu1 %v126_v17  ;;  %1306 = vmatpush3.bf16.msra.mxu0 %v1392_v40 }
  0x95   :  { %1148 = vmatprep.mubr.msk.bf16.mxu1 %vm652_vm0, %v135_v18 }
  0x9c   :  { %905 = vmatmul.mubr.bf16.gmra.mrb[20].mxu1 %v134_v23 }
  0x9d   :  { %1149 = vmatprep.mubr.msk.bf16.mxu1 %vm652_vm0, %v143_v24 }
  0xa4   :  { %913 = vmatmul.mubr.bf16.gmra.mrb[24].mxu1 %v142_v28 }
  0xa5   :  { %1150 = vmatprep.mubr.msk.bf16.mxu1 %vm652_vm0, %v151_v29 }
  0xac   :  { %921 = vmatmul.mubr.bf16.gmra.mrb[28].mxu1 %v150_v32 }
 0x12a   :  { %v1175_v41 = vpop.f32.mrb[0].mxu0 }
 0x12b   :  { %v1215_v42 = vpop.f32.mrb[0].mxu1  ;;  %v1176_v44 = vpop.f32.mrb[1].mxu0 }
 0x12c   :  { %v1177_v45 = vadd.f32 %v1176_v44, %v1175_v41  ;;  %v1216_v46 = vpop.f32.mrb[1].mxu1  ;;  %v1178_v47 = vpop.f32.mrb[2].mxu0 }
 0x12d   :  { %v1217_v48 = vadd.f32 %v1216_v46, %v1215_v42  ;;  %v1218_v49 = vpop.f32.mrb[2].mxu1  ;;  %v1179_v50 = vpop.f32.mrb[3].mxu0 }
 0x12e   :  { %v1180_v51 = vadd.f32 %v1179_v50, %v1178_v47  ;;  %v1219_v52 = vpop.f32.mrb[3].mxu1 }
 0x12f   :  { %v769_v53 = vadd.f32 %v1217_v48, %v1177_v45  ;;  %v1220_v54 = vadd.f32 %v1219_v52, %v1218_v49 }
 0x131   :  { %v772_v55 = vadd.f32 %v1220_v54, %v1180_v51 }
 0x132   :  { %v1181_v56 = vpop.f32.mrb[4].mxu0 }
 0x133   :  { %v1182_v57 = vpop.f32.mrb[5].mxu0 }
 0x134   :  { %v1183_v58 = vadd.f32 %v1182_v57, %v1181_v56  ;;  %v1184_v59 = vpop.f32.mrb[6].mxu0 }
 0x135   :  { %v1185_v60 = vpop.f32.mrb[7].mxu0  ;;  %v1221_v8 = vpop.f32.mrb[4].mxu1 }
 0x136   :  { %v1186_v61 = vadd.f32 %v1185_v60, %v1184_v59  ;;  %v1222_v10 = vpop.f32.mrb[5].mxu1 }
 0x137   :  { %v1223_v12 = vadd.f32 %v1222_v10, %v1221_v8  ;;  %v1224_v13 = vpop.f32.mrb[6].mxu1 }
 0x138   :  { %v1225_v14 = vpop.f32.mrb[7].mxu1 }
 0x139   :  { %v777_v15 = vadd.f32 %v1223_v12, %v1183_v58  ;;  %v1226_v16 = vadd.f32 %v1225_v14, %v1224_v13 }
 0x13a   :  { %v1187_v62 = vpop.f32.mrb[8].mxu0 }
 0x13b   :  { %v1188_v63 = vpop.f32.mrb[9].mxu0  ;;  %v780_v18 = vadd.f32 %v1226_v16, %v1186_v61 }
 0x13c   :  { %v1189_v0 = vadd.f32 %v1188_v63, %v1187_v62  ;;  %v1190_v1 = vpop.f32.mrb[10].mxu0 }
 0x13d   :  { %v1191_v2 = vpop.f32.mrb[11].mxu0  ;;  %v1227_v23 = vpop.f32.mrb[8].mxu1 }
 0x13e   :  { %v1192_v3 = vadd.f32 %v1191_v2, %v1190_v1  ;;  %v1228_v43 = vpop.f32.mrb[9].mxu1 }
 0x13f   :  { %v1229_v26 = vadd.f32 %v1228_v43, %v1227_v23  ;;  %v1230_v27 = vpop.f32.mrb[10].mxu1 }
 0x140   :  { %v1231_v28 = vpop.f32.mrb[11].mxu1 }
 0x141   :  { %v785_v30 = vadd.f32 %v1229_v26, %v1189_v0  ;;  %v1232_v31 = vadd.f32 %v1231_v28, %v1230_v27 }
 0x142   :  { %v1193_v4 = vpop.f32.mrb[12].mxu0 }
 0x143   :  { %v1194_v5 = vpop.f32.mrb[13].mxu0  ;;  %v788_v33 = vadd.f32 %v1232_v31, %v1192_v3 }
 0x144   :  { %v1195_v6 = vadd.f32 %v1194_v5, %v1193_v4  ;;  %v1196_v7 = vpop.f32.mrb[14].mxu0 }
 0x145   :  { %v1197_v9 = vpop.f32.mrb[15].mxu0  ;;  %v1233_v38 = vpop.f32.mrb[12].mxu1 }
 0x146   :  { %v1198_v11 = vadd.f32 %v1197_v9, %v1196_v7  ;;  %v1234_v40 = vpop.f32.mrb[13].mxu1 }
 0x147   :  { %v1235_v42 = vadd.f32 %v1234_v40, %v1233_v38  ;;  %v1236_v44 = vpop.f32.mrb[14].mxu1 }
 0x148   :  { %v1237_v45 = vpop.f32.mrb[15].mxu1 }
 0x149   :  { %v793_v47 = vadd.f32 %v1235_v42, %v1195_v6  ;;  %v1238_v48 = vadd.f32 %v1237_v45, %v1236_v44 }
 0x14a   :  { %v1255_v17 = vpop.f32.mrb[16].mxu0 }
 0x14b   :  { %v1256_v19 = vpop.f32.mrb[17].mxu0  ;;  %v796_v50 = vadd.f32 %v1238_v48, %v1198_v11 }
 0x14c   :  { %v1257_v20 = vadd.f32 %v1256_v19, %v1255_v17  ;;  %v1258_v21 = vpop.f32.mrb[18].mxu0 }
 0x14d   :  { %v1259_v22 = vpop.f32.mrb[19].mxu0 }
 0x14e   :  { %v1260_v24 = vadd.f32 %v1259_v22, %v1258_v21  ;;  %v834_v25 = vadd.f32 %v1257_v20, %v769_v53 }
 0x150   :  { %v837_v29 = vadd.f32 %v1260_v24, %v772_v55 }
 0x152   :  { %v1261_v32 = vpop.f32.mrb[20].mxu0 }
 0x153   :  { %v1262_v34 = vpop.f32.mrb[21].mxu0 }
 0x154   :  { %v1263_v35 = vadd.f32 %v1262_v34, %v1261_v32  ;;  %v1264_v36 = vpop.f32.mrb[22].mxu0 }
 0x155   :  { %v1265_v37 = vpop.f32.mrb[23].mxu0 }
 0x156   :  { %v1266_v39 = vadd.f32 %v1265_v37, %v1264_v36  ;;  %v842_v41 = vadd.f32 %v1263_v35, %v777_v15 }
 0x158   :  { %v845_v46 = vadd.f32 %v1266_v39, %v780_v18 }
 0x15a   :  { %v1267_v49 = vpop.f32.mrb[24].mxu0 }
 0x15b   :  { %v1268_v51 = vpop.f32.mrb[25].mxu0 }
 0x15c   :  { %v1269_v52 = vadd.f32 %v1268_v51, %v1267_v49  ;;  %v1270_v53 = vpop.f32.mrb[26].mxu0 }
 0x15d   :  { %v1271_v54 = vpop.f32.mrb[27].mxu0 }
 0x15e   :  { %v1272_v55 = vadd.f32 %v1271_v54, %v1270_v53  ;;  %v850_v56 = vadd.f32 %v1269_v52, %v785_v30 }
 0x160   :  { %v853_v57 = vadd.f32 %v1272_v55, %v788_v33 }
 0x162   :  { %v1273_v58 = vpop.f32.mrb[28].mxu0 }
 0x163   :  { %v1274_v59 = vpop.f32.mrb[29].mxu0 }
 0x164   :  { %v1275_v60 = vadd.f32 %v1274_v59, %v1273_v58  ;;  %v1276_v61 = vpop.f32.mrb[30].mxu0 }
 0x165   :  { %v1277_v62 = vpop.f32.mrb[31].mxu0 }
 0x166   :  { %v1278_v63 = vadd.f32 %v1277_v62, %v1276_v61  ;;  %v858_v0 = vadd.f32 %v1275_v60, %v793_v47 }
 0x167   :  { %v898_v1 = vpop.f32.mrb[16].mxu1 }
 0x168   :  { %v899_v2 = vadd.f32 %v898_v1, %v834_v25  ;;  %v900_v3 = vpop.f32.mrb[17].mxu1  ;;  %v861_v4 = vadd.f32 %v1278_v63, %v796_v50 }
 0x169   :  { %v901_v5 = vpop.f32.mrb[18].mxu1 }
 0x16a   :  { %v902_v6 = vadd.f32 %v901_v5, %v837_v29  ;;  %v903_v7 = vpop.f32.mrb[19].mxu1  ;;  %v929_v8 = vmax.f32 %v899_v2, 0.0 }
 0x16c   :  { %v930_v9 = vmax.f32 %v902_v6, 0.0 }
 0x16e   :  { %v937_v10 = vpack.c.bf16 %v930_v9, %v929_v8 }
 0x16f   :  { %v906_v11 = vpop.f32.mrb[20].mxu1 }
 0x170   :  { %v907_v12 = vadd.f32 %v906_v11, %v842_v41  ;;  %v908_v13 = vpop.f32.mrb[21].mxu1  ;;  %1307 = vmatprep.mubr.bf16.mxu0 %v937_v10 }
 0x171   :  { %v909_v14 = vpop.f32.mrb[22].mxu1 }
 0x172   :  { %v910_v15 = vadd.f32 %v909_v14, %v845_v46  ;;  %v911_v16 = vpop.f32.mrb[23].mxu1  ;;  %v931_v17 = vmax.f32 %v907_v12, 0.0 }
 0x174   :  { %v932_v18 = vmax.f32 %v910_v15, 0.0 }
 0x176   :  { %v938_v19 = vpack.c.bf16 %v932_v18, %v931_v17 }
 0x177   :  { %v914_v20 = vpop.f32.mrb[24].mxu1 }
 0x178   :  { %v915_v21 = vadd.f32 %v914_v20, %v850_v56  ;;  %v916_v22 = vpop.f32.mrb[25].mxu1  ;;  %1308 = vmatmul.mubr.bf16.vlgmr.msra.gmra.mrb[32].mxu0 %v938_v19 }
 0x179   :  { %v917_v23 = vpop.f32.mrb[26].mxu1 }
 0x17a   :  { %v918_v24 = vadd.f32 %v917_v23, %v853_v57  ;;  %v919_v43 = vpop.f32.mrb[27].mxu1  ;;  %v933_v25 = vmax.f32 %v915_v21, 0.0 }
 0x17c   :  { %v934_v26 = vmax.f32 %v918_v24, 0.0 }
 0x17e   :  { %v939_v27 = vpack.c.bf16 %v934_v26, %v933_v25 }
 0x17f   :  { %v922_v28 = vpop.f32.mrb[28].mxu1 }
 0x180   :  { %v923_v29 = vadd.f32 %v922_v28, %v858_v0  ;;  %v924_v30 = vpop.f32.mrb[29].mxu1  ;;  %1311 = vmatprep.mubr.bf16.mxu0 %v939_v27 }
 0x181   :  { %v925_v31 = vpop.f32.mrb[30].mxu1 }
 0x182   :  { %v926_v32 = vadd.f32 %v925_v31, %v861_v4  ;;  %v927_v33 = vpop.f32.mrb[31].mxu1  ;;  %v935_v34 = vmax.f32 %v923_v29, 0.0 }
 0x184   :  { %v936_v35 = vmax.f32 %v926_v32, 0.0 }
 0x186   :  { %v940_v36 = vpack.c.bf16 %v936_v35, %v935_v34 }
 0x188   :  { %1312 = vmatmul.mubr.bf16.gmra.mrb[36].mxu0 %v940_v36 }
 0x24b   :  { %v1309_v37 = vpop.f32.mrb[32].mxu0 }
 0x24c   :  { %1072 = vst [vmem:[%s1579_s3 + $0x10] sm:$0xff] %v1309_v37  ;;  %v1039_v38 = vpop.f32.mrb[33].mxu0 }
 0x24d   :  { %1070 = vst [vmem:[%s1579_s3] sm:$0xff] %v1039_v38  ;;  %v1310_v39 = vpop.f32.mrb[34].mxu0 }
 0x24e   :  { %1073 = vst [vmem:[%s1579_s3 + $0x18] sm:$0xff] %v1310_v39  ;;  %v1042_v40 = vpop.f32.mrb[35].mxu0 }
 0x24f   :  { %1071 = vst [vmem:[%s1579_s3 + $0x8] sm:$0xff] %v1042_v40 }
 0x25b   :  { %v1313_v41 = vpop.f32.mrb[36].mxu0 }
 0x25c   :  { %1076 = vst [vmem:[%s1579_s3 + $0x30] sm:$0xff] %v1313_v41  ;;  %v1055_v42 = vpop.f32.mrb[37].mxu0 }
 0x25d   :  { %1074 = vst [vmem:[%s1579_s3 + $0x20] sm:$0xff] %v1055_v42  ;;  %v1314_v44 = vpop.f32.mrb[38].mxu0 }
 0x25e   :  { %1077 = vst [vmem:[%s1579_s3 + $0x38] sm:$0xff] %v1314_v44  ;;  %v1058_v45 = vpop.f32.mrb[39].mxu0 }
 0x25f   :  { %1075 = vst [vmem:[%s1579_s3 + $0x28] sm:$0xff] %v1058_v45 }
 0x260   :  { %1082 = vsyncpa [#allocation3], 1 }
 0x261   :  { %1083 = vsyncpa [#allocation5], 1 }

</bundles_post_ra>
